<compile_context>
chip_gen: v5e
topology: v5e:2x2
jax: 0.10.0
libtpu: 0.0.40
codegen_flags: <defaults>
</compile_context>

<pallas_src>
import functools

import jax
import jax.numpy as jnp
import numpy as np
from jax.experimental import pallas as pl
from jax.experimental.pallas import tpu as pltpu


def _psi3_kernel(x_ref, o_ref, *, bs, K, KS, padding, H, W):
    """x_ref: (1, Ct, H*W) spatially-flattened channel slab for one batch element.
       o_ref: (1, bs*bs, Ct, KS*KS) all bs*bs patches for this (batch, channel-chunk)."""
    ct = o_ref.shape[2]
    # Fully static unroll over patches / rows: every slice offset & size is a Python int,
    # so the body is a sequence of plain vector copies (no scalar control flow).
    for ph in range(bs):
        r_lo = ph * K - padding
        r0 = max(r_lo, 0)
        r1 = min(ph * K + K + padding, H)
        rh = r1 - r0
        dr = r0 - r_lo
        for pw in range(bs):
            p = ph * bs + pw
            c_lo = pw * K - padding
            c0 = max(c_lo, 0)
            c1 = min(pw * K + K + padding, W)
            cw = c1 - c0
            dc = c0 - c_lo
            if rh < KS or cw < KS:  # static: edge patch -> zero its slot before the copy
                o_ref[0, p, :, :] = jnp.zeros((ct, KS * KS), dtype=o_ref.dtype)
            for i in range(rh):     # copy the valid interior rows of this patch
                r = r0 + i          # source row in the (unpadded) image
                o_ref[0, p, :, pl.ds((dr + i) * KS + dc, cw)] = (
                    x_ref[0, :, pl.ds(r * W + c0, cw)])


def _round_up(v, m):
    return (v + m - 1) // m * m


def _padded_block_bytes(ct, bs, KS, HW, itemsize):
    """Double-buffered VMEM footprint of one input slab + one output block,
    accounting for (sublane, 128-lane) tiling of the last two dims."""
    sub = max(8, 32 // itemsize)  # sublane multiple: f32 -> 8, bf16 -> 16, int8 -> 32
    in_b = _round_up(ct, sub) * _round_up(HW, 128) * itemsize
    out_b = bs * bs * _round_up(ct, sub) * _round_up(KS * KS, 128) * itemsize
    return 2 * (in_b + out_b)  # x2: default double buffering of each operand


def _pick_channel_tile(C, bs, KS, HW, itemsize, budget_bytes=24 * 1024 * 1024):
    """Largest divisor of C whose padded, double-buffered footprint fits the budget."""
    ct = 1
    for cand in range(1, C + 1):
        if C % cand == 0 and _padded_block_bytes(cand, bs, KS, HW, itemsize) <= budget_bytes:
            ct = cand
    return ct


def psi3_forward(x, block_size, padding=0):
    """JAX/Pallas equivalent of psi3.forward (x is NCHW)."""
    B, C, H, W = x.shape
    bs = block_size
    if H % bs != 0 or W % bs != 0:
        raise ValueError("height and width must be divisible by block_size")
    K = H // bs
    KS = K + 2 * padding
    itemsize = jnp.dtype(x.dtype).itemsize

    Ct = _pick_channel_tile(C, bs, KS, H * W, itemsize)
    nC = C // Ct
    # TODO(synk): add row-band spatial tiling (bands that are multiples of K) for feature
    # maps so large that even the Ct=1 padded footprint exceeds the VMEM budget (e.g. on
    # v7x's 64 MiB per-TC VMEM); unnecessary at this module's typical shapes.
    footprint = _padded_block_bytes(Ct, bs, KS, H * W, itemsize)
    vmem_limit = max(40 * 1024 * 1024, footprint + 8 * 1024 * 1024)

    kernel = functools.partial(
        _psi3_kernel, bs=bs, K=K, KS=KS, padding=padding, H=H, W=W)

    out4 = pl.pallas_call(
        kernel,
        out_shape=jax.ShapeDtypeStruct((B, bs * bs, C, KS * KS), x.dtype),
        grid=(B, nC),
        in_specs=[pl.BlockSpec((1, Ct, H * W), lambda b, cc: (b, cc, 0))],
        out_specs=pl.BlockSpec((1, bs * bs, Ct, KS * KS), lambda b, cc: (b, 0, cc, 0)),
        compiler_params=pltpu.CompilerParams(
            dimension_semantics=("parallel", "parallel"),
            vmem_limit_bytes=vmem_limit),
        cost_estimate=pl.CostEstimate(
            flops=0,
            transcendentals=0,
            bytes_accessed=(B * C * H * W + B * bs * bs * C * KS * KS) * itemsize),
    )(x.reshape(B, C, H * W))  # free contiguous reshape (spatial flatten)
    # Free contiguous reshape: (B, bs*bs, C, KS*KS) -> (B, bs*bs*C, KS, KS);
    # channel index becomes (ph*bs + pw)*C + c, exactly the PyTorch ordering.
    return out4.reshape(B, bs * bs * C, KS, KS)


def psi3_reference(x, block_size, padding=0):
    """Pure-JAX reference mirroring the nn.Unfold-based forward."""
    B, C, H, W = x.shape
    K = H // block_size
    KS = K + 2 * padding
    xp = jnp.pad(x, ((0, 0), (0, 0), (padding, padding), (padding, padding)))
    patches = []
    for ph in range(block_size):
        for pw in range(block_size):
            patches.append(xp[:, :, ph * K:ph * K + KS, pw * K:pw * K + KS])
    return jnp.concatenate(patches, axis=1)


if __name__ == "__main__":
    key = jax.random.PRNGKey(0)
    B, C, H, W = 2, 4, 16, 16
    x = jax.random.normal(key, (B, C, H, W), dtype=jnp.float32)

    # block_size = 2, padding = 0
    bs = 2
    out0 = jax.block_until_ready(psi3_forward(x, block_size=bs, padding=0))
    ref0 = psi3_reference(x, block_size=bs, padding=0)
    assert out0.shape == (B, bs * bs * C, H // bs, W // bs), out0.shape
    np.testing.assert_allclose(np.asarray(out0), np.asarray(ref0), rtol=0, atol=0)

    # block_size = 2, padding = 1 (overlapping, zero-padded patches)
    out1 = jax.block_until_ready(psi3_forward(x, block_size=bs, padding=1))
    ref1 = psi3_reference(x, block_size=bs, padding=1)
    assert out1.shape == (B, bs * bs * C, H // bs + 2, W // bs + 2), out1.shape
    np.testing.assert_allclose(np.asarray(out1), np.asarray(ref1), rtol=0, atol=0)

    # block_size = 4, padding = 2 (more patches, larger zero border)
    bs2 = 4
    out2 = jax.block_until_ready(psi3_forward(x, block_size=bs2, padding=2))
    ref2 = psi3_reference(x, block_size=bs2, padding=2)
    assert out2.shape == (B, bs2 * bs2 * C, H // bs2 + 4, W // bs2 + 4), out2.shape
    np.testing.assert_allclose(np.asarray(out2), np.asarray(ref2), rtol=0, atol=0)

    print("KERNEL_OK")
</pallas_src>

<mosaic_0001>
module attributes {stable_mosaic.version = 11 : i64} {
  func.func @_psi3_kernel(%arg0: i32, %arg1: i32, %arg2: memref<1x4x256xf32, #tpu.memory_space<vmem>>, %arg3: memref<1x4x4x64xf32, #tpu.memory_space<vmem>>) attributes {dimension_semantics = [#tpu.dimension_semantics<parallel>, #tpu.dimension_semantics<parallel>], iteration_bounds = array<i64: 2, 1>, scalar_prefetch = 0 : i64, scratch_operands = 0 : i64, tpu.core_type = #tpu.core_type<tc>, window_params = [{transform_indices = @transform_0, window_bounds = array<i64: 1, 4, 256>}, {transform_indices = @transform_1, window_bounds = array<i64: 1, 4, 4, 64>}]} {
    %c0 = arith.constant 0 : index
    %c0_0 = arith.constant 0 : index
    %c0_1 = arith.constant 0 : index
    %0 = vector.load %arg2[%c0, %c0_0, %c0_1] : memref<1x4x256xf32, #tpu.memory_space<vmem>>, vector<1x4x8xf32>
    %1 = vector.shape_cast %0 : vector<1x4x8xf32> to vector<4x8xf32>
    %c0_2 = arith.constant 0 : index
    %c0_3 = arith.constant 0 : index
    %c0_4 = arith.constant 0 : index
    %c0_5 = arith.constant 0 : index
    %2 = vector.load %arg3[%c0_2, %c0_3, %c0_4, %c0_5] : memref<1x4x4x64xf32, #tpu.memory_space<vmem>>, vector<1x1x4x8xf32>
    %3 = vector.shape_cast %2 : vector<1x1x4x8xf32> to vector<4x8xf32>
    %4 = vector.shape_cast %1 : vector<4x8xf32> to vector<1x1x4x8xf32>
    tpu.vector_store %arg3[%c0_2, %c0_3, %c0_4, %c0_5], %4 {strides = array<i32>} : memref<1x4x4x64xf32, #tpu.memory_space<vmem>>, vector<1x1x4x8xf32>,
    %c0_6 = arith.constant 0 : index
    %c0_7 = arith.constant 0 : index
    %c16 = arith.constant 16 : index
    %5 = vector.load %arg2[%c0_6, %c0_7, %c16] : memref<1x4x256xf32, #tpu.memory_space<vmem>>, vector<1x4x8xf32>
    %6 = vector.shape_cast %5 : vector<1x4x8xf32> to vector<4x8xf32>
    %c0_8 = arith.constant 0 : index
    %c0_9 = arith.constant 0 : index
    %c0_10 = arith.constant 0 : index
    %c8 = arith.constant 8 : index
    %7 = vector.load %arg3[%c0_8, %c0_9, %c0_10, %c8] : memref<1x4x4x64xf32, #tpu.memory_space<vmem>>, vector<1x1x4x8xf32>
    %8 = vector.shape_cast %7 : vector<1x1x4x8xf32> to vector<4x8xf32>
    %9 = vector.shape_cast %6 : vector<4x8xf32> to vector<1x1x4x8xf32>
    tpu.vector_store %arg3[%c0_8, %c0_9, %c0_10, %c8], %9 {strides = array<i32>} : memref<1x4x4x64xf32, #tpu.memory_space<vmem>>, vector<1x1x4x8xf32>,
    %c0_11 = arith.constant 0 : index
    %c0_12 = arith.constant 0 : index
    %c32 = arith.constant 32 : index
    %10 = vector.load %arg2[%c0_11, %c0_12, %c32] : memref<1x4x256xf32, #tpu.memory_space<vmem>>, vector<1x4x8xf32>
    %11 = vector.shape_cast %10 : vector<1x4x8xf32> to vector<4x8xf32>
    %c0_13 = arith.constant 0 : index
    %c0_14 = arith.constant 0 : index
    %c0_15 = arith.constant 0 : index
    %c16_16 = arith.constant 16 : index
    %12 = vector.load %arg3[%c0_13, %c0_14, %c0_15, %c16_16] : memref<1x4x4x64xf32, #tpu.memory_space<vmem>>, vector<1x1x4x8xf32>
    %13 = vector.shape_cast %12 : vector<1x1x4x8xf32> to vector<4x8xf32>
    %14 = vector.shape_cast %11 : vector<4x8xf32> to vector<1x1x4x8xf32>
    tpu.vector_store %arg3[%c0_13, %c0_14, %c0_15, %c16_16], %14 {strides = array<i32>} : memref<1x4x4x64xf32, #tpu.memory_space<vmem>>, vector<1x1x4x8xf32>,
    %c0_17 = arith.constant 0 : index
    %c0_18 = arith.constant 0 : index
    %c48 = arith.constant 48 : index
    %15 = vector.load %arg2[%c0_17, %c0_18, %c48] : memref<1x4x256xf32, #tpu.memory_space<vmem>>, vector<1x4x8xf32>
    %16 = vector.shape_cast %15 : vector<1x4x8xf32> to vector<4x8xf32>
    %c0_19 = arith.constant 0 : index
    %c0_20 = arith.constant 0 : index
    %c0_21 = arith.constant 0 : index
    %c24 = arith.constant 24 : index
    %17 = vector.load %arg3[%c0_19, %c0_20, %c0_21, %c24] : memref<1x4x4x64xf32, #tpu.memory_space<vmem>>, vector<1x1x4x8xf32>
    %18 = vector.shape_cast %17 : vector<1x1x4x8xf32> to vector<4x8xf32>
    %19 = vector.shape_cast %16 : vector<4x8xf32> to vector<1x1x4x8xf32>
    tpu.vector_store %arg3[%c0_19, %c0_20, %c0_21, %c24], %19 {strides = array<i32>} : memref<1x4x4x64xf32, #tpu.memory_space<vmem>>, vector<1x1x4x8xf32>,
    %c0_22 = arith.constant 0 : index
    %c0_23 = arith.constant 0 : index
    %c64 = arith.constant 64 : index
    %20 = vector.load %arg2[%c0_22, %c0_23, %c64] : memref<1x4x256xf32, #tpu.memory_space<vmem>>, vector<1x4x8xf32>
    %21 = vector.shape_cast %20 : vector<1x4x8xf32> to vector<4x8xf32>
    %c0_24 = arith.constant 0 : index
    %c0_25 = arith.constant 0 : index
    %c0_26 = arith.constant 0 : index
    %c32_27 = arith.constant 32 : index
    %22 = vector.load %arg3[%c0_24, %c0_25, %c0_26, %c32_27] : memref<1x4x4x64xf32, #tpu.memory_space<vmem>>, vector<1x1x4x8xf32>
    %23 = vector.shape_cast %22 : vector<1x1x4x8xf32> to vector<4x8xf32>
    %24 = vector.shape_cast %21 : vector<4x8xf32> to vector<1x1x4x8xf32>
    tpu.vector_store %arg3[%c0_24, %c0_25, %c0_26, %c32_27], %24 {strides = array<i32>} : memref<1x4x4x64xf32, #tpu.memory_space<vmem>>, vector<1x1x4x8xf32>,
    %c0_28 = arith.constant 0 : index
    %c0_29 = arith.constant 0 : index
    %c80 = arith.constant 80 : index
    %25 = vector.load %arg2[%c0_28, %c0_29, %c80] : memref<1x4x256xf32, #tpu.memory_space<vmem>>, vector<1x4x8xf32>
    %26 = vector.shape_cast %25 : vector<1x4x8xf32> to vector<4x8xf32>
    %c0_30 = arith.constant 0 : index
    %c0_31 = arith.constant 0 : index
    %c0_32 = arith.constant 0 : index
    %c40 = arith.constant 40 : index
    %27 = vector.load %arg3[%c0_30, %c0_31, %c0_32, %c40] : memref<1x4x4x64xf32, #tpu.memory_space<vmem>>, vector<1x1x4x8xf32>
    %28 = vector.shape_cast %27 : vector<1x1x4x8xf32> to vector<4x8xf32>
    %29 = vector.shape_cast %26 : vector<4x8xf32> to vector<1x1x4x8xf32>
    tpu.vector_store %arg3[%c0_30, %c0_31, %c0_32, %c40], %29 {strides = array<i32>} : memref<1x4x4x64xf32, #tpu.memory_space<vmem>>, vector<1x1x4x8xf32>,
    %c0_33 = arith.constant 0 : index
    %c0_34 = arith.constant 0 : index
    %c96 = arith.constant 96 : index
    %30 = vector.load %arg2[%c0_33, %c0_34, %c96] : memref<1x4x256xf32, #tpu.memory_space<vmem>>, vector<1x4x8xf32>
    %31 = vector.shape_cast %30 : vector<1x4x8xf32> to vector<4x8xf32>
    %c0_35 = arith.constant 0 : index
    %c0_36 = arith.constant 0 : index
    %c0_37 = arith.constant 0 : index
    %c48_38 = arith.constant 48 : index
    %32 = vector.load %arg3[%c0_35, %c0_36, %c0_37, %c48_38] : memref<1x4x4x64xf32, #tpu.memory_space<vmem>>, vector<1x1x4x8xf32>
    %33 = vector.shape_cast %32 : vector<1x1x4x8xf32> to vector<4x8xf32>
    %34 = vector.shape_cast %31 : vector<4x8xf32> to vector<1x1x4x8xf32>
    tpu.vector_store %arg3[%c0_35, %c0_36, %c0_37, %c48_38], %34 {strides = array<i32>} : memref<1x4x4x64xf32, #tpu.memory_space<vmem>>, vector<1x1x4x8xf32>,
    %c0_39 = arith.constant 0 : index
    %c0_40 = arith.constant 0 : index
    %c112 = arith.constant 112 : index
    %35 = vector.load %arg2[%c0_39, %c0_40, %c112] : memref<1x4x256xf32, #tpu.memory_space<vmem>>, vector<1x4x8xf32>
    %36 = vector.shape_cast %35 : vector<1x4x8xf32> to vector<4x8xf32>
    %c0_41 = arith.constant 0 : index
    %c0_42 = arith.constant 0 : index
    %c0_43 = arith.constant 0 : index
    %c56 = arith.constant 56 : index
    %37 = vector.load %arg3[%c0_41, %c0_42, %c0_43, %c56] : memref<1x4x4x64xf32, #tpu.memory_space<vmem>>, vector<1x1x4x8xf32>
    %38 = vector.shape_cast %37 : vector<1x1x4x8xf32> to vector<4x8xf32>
    %39 = vector.shape_cast %36 : vector<4x8xf32> to vector<1x1x4x8xf32>
    tpu.vector_store %arg3[%c0_41, %c0_42, %c0_43, %c56], %39 {strides = array<i32>} : memref<1x4x4x64xf32, #tpu.memory_space<vmem>>, vector<1x1x4x8xf32>,
    %c0_44 = arith.constant 0 : index
    %c0_45 = arith.constant 0 : index
    %c8_46 = arith.constant 8 : index
    %40 = vector.load %arg2[%c0_44, %c0_45, %c8_46] : memref<1x4x256xf32, #tpu.memory_space<vmem>>, vector<1x4x8xf32>
    %41 = vector.shape_cast %40 : vector<1x4x8xf32> to vector<4x8xf32>
    %c0_47 = arith.constant 0 : index
    %c1 = arith.constant 1 : index
    %c0_48 = arith.constant 0 : index
    %c0_49 = arith.constant 0 : index
    %42 = vector.load %arg3[%c0_47, %c1, %c0_48, %c0_49] : memref<1x4x4x64xf32, #tpu.memory_space<vmem>>, vector<1x1x4x8xf32>
    %43 = vector.shape_cast %42 : vector<1x1x4x8xf32> to vector<4x8xf32>
    %44 = vector.shape_cast %41 : vector<4x8xf32> to vector<1x1x4x8xf32>
    tpu.vector_store %arg3[%c0_47, %c1, %c0_48, %c0_49], %44 {strides = array<i32>} : memref<1x4x4x64xf32, #tpu.memory_space<vmem>>, vector<1x1x4x8xf32>,
    %c0_50 = arith.constant 0 : index
    %c0_51 = arith.constant 0 : index
    %c24_52 = arith.constant 24 : index
    %45 = vector.load %arg2[%c0_50, %c0_51, %c24_52] : memref<1x4x256xf32, #tpu.memory_space<vmem>>, vector<1x4x8xf32>
    %46 = vector.shape_cast %45 : vector<1x4x8xf32> to vector<4x8xf32>
    %c0_53 = arith.constant 0 : index
    %c1_54 = arith.constant 1 : index
    %c0_55 = arith.constant 0 : index
    %c8_56 = arith.constant 8 : index
    %47 = vector.load %arg3[%c0_53, %c1_54, %c0_55, %c8_56] : memref<1x4x4x64xf32, #tpu.memory_space<vmem>>, vector<1x1x4x8xf32>
    %48 = vector.shape_cast %47 : vector<1x1x4x8xf32> to vector<4x8xf32>
    %49 = vector.shape_cast %46 : vector<4x8xf32> to vector<1x1x4x8xf32>
    tpu.vector_store %arg3[%c0_53, %c1_54, %c0_55, %c8_56], %49 {strides = array<i32>} : memref<1x4x4x64xf32, #tpu.memory_space<vmem>>, vector<1x1x4x8xf32>,
    %c0_57 = arith.constant 0 : index
    %c0_58 = arith.constant 0 : index
    %c40_59 = arith.constant 40 : index
    %50 = vector.load %arg2[%c0_57, %c0_58, %c40_59] : memref<1x4x256xf32, #tpu.memory_space<vmem>>, vector<1x4x8xf32>
    %51 = vector.shape_cast %50 : vector<1x4x8xf32> to vector<4x8xf32>
    %c0_60 = arith.constant 0 : index
    %c1_61 = arith.constant 1 : index
    %c0_62 = arith.constant 0 : index
    %c16_63 = arith.constant 16 : index
    %52 = vector.load %arg3[%c0_60, %c1_61, %c0_62, %c16_63] : memref<1x4x4x64xf32, #tpu.memory_space<vmem>>, vector<1x1x4x8xf32>
    %53 = vector.shape_cast %52 : vector<1x1x4x8xf32> to vector<4x8xf32>
    %54 = vector.shape_cast %51 : vector<4x8xf32> to vector<1x1x4x8xf32>
    tpu.vector_store %arg3[%c0_60, %c1_61, %c0_62, %c16_63], %54 {strides = array<i32>} : memref<1x4x4x64xf32, #tpu.memory_space<vmem>>, vector<1x1x4x8xf32>,
    %c0_64 = arith.constant 0 : index
    %c0_65 = arith.constant 0 : index
    %c56_66 = arith.constant 56 : index
    %55 = vector.load %arg2[%c0_64, %c0_65, %c56_66] : memref<1x4x256xf32, #tpu.memory_space<vmem>>, vector<1x4x8xf32>
    %56 = vector.shape_cast %55 : vector<1x4x8xf32> to vector<4x8xf32>
    %c0_67 = arith.constant 0 : index
    %c1_68 = arith.constant 1 : index
    %c0_69 = arith.constant 0 : index
    %c24_70 = arith.constant 24 : index
    %57 = vector.load %arg3[%c0_67, %c1_68, %c0_69, %c24_70] : memref<1x4x4x64xf32, #tpu.memory_space<vmem>>, vector<1x1x4x8xf32>
    %58 = vector.shape_cast %57 : vector<1x1x4x8xf32> to vector<4x8xf32>
    %59 = vector.shape_cast %56 : vector<4x8xf32> to vector<1x1x4x8xf32>
    tpu.vector_store %arg3[%c0_67, %c1_68, %c0_69, %c24_70], %59 {strides = array<i32>} : memref<1x4x4x64xf32, #tpu.memory_space<vmem>>, vector<1x1x4x8xf32>,
    %c0_71 = arith.constant 0 : index
    %c0_72 = arith.constant 0 : index
    %c72 = arith.constant 72 : index
    %60 = vector.load %arg2[%c0_71, %c0_72, %c72] : memref<1x4x256xf32, #tpu.memory_space<vmem>>, vector<1x4x8xf32>
    %61 = vector.shape_cast %60 : vector<1x4x8xf32> to vector<4x8xf32>
    %c0_73 = arith.constant 0 : index
    %c1_74 = arith.constant 1 : index
    %c0_75 = arith.constant 0 : index
    %c32_76 = arith.constant 32 : index
    %62 = vector.load %arg3[%c0_73, %c1_74, %c0_75, %c32_76] : memref<1x4x4x64xf32, #tpu.memory_space<vmem>>, vector<1x1x4x8xf32>
    %63 = vector.shape_cast %62 : vector<1x1x4x8xf32> to vector<4x8xf32>
    %64 = vector.shape_cast %61 : vector<4x8xf32> to vector<1x1x4x8xf32>
    tpu.vector_store %arg3[%c0_73, %c1_74, %c0_75, %c32_76], %64 {strides = array<i32>} : memref<1x4x4x64xf32, #tpu.memory_space<vmem>>, vector<1x1x4x8xf32>,
    %c0_77 = arith.constant 0 : index
    %c0_78 = arith.constant 0 : index
    %c88 = arith.constant 88 : index
    %65 = vector.load %arg2[%c0_77, %c0_78, %c88] : memref<1x4x256xf32, #tpu.memory_space<vmem>>, vector<1x4x8xf32>
    %66 = vector.shape_cast %65 : vector<1x4x8xf32> to vector<4x8xf32>
    %c0_79 = arith.constant 0 : index
    %c1_80 = arith.constant 1 : index
    %c0_81 = arith.constant 0 : index
    %c40_82 = arith.constant 40 : index
    %67 = vector.load %arg3[%c0_79, %c1_80, %c0_81, %c40_82] : memref<1x4x4x64xf32, #tpu.memory_space<vmem>>, vector<1x1x4x8xf32>
    %68 = vector.shape_cast %67 : vector<1x1x4x8xf32> to vector<4x8xf32>
    %69 = vector.shape_cast %66 : vector<4x8xf32> to vector<1x1x4x8xf32>
    tpu.vector_store %arg3[%c0_79, %c1_80, %c0_81, %c40_82], %69 {strides = array<i32>} : memref<1x4x4x64xf32, #tpu.memory_space<vmem>>, vector<1x1x4x8xf32>,
    %c0_83 = arith.constant 0 : index
    %c0_84 = arith.constant 0 : index
    %c104 = arith.constant 104 : index
    %70 = vector.load %arg2[%c0_83, %c0_84, %c104] : memref<1x4x256xf32, #tpu.memory_space<vmem>>, vector<1x4x8xf32>
    %71 = vector.shape_cast %70 : vector<1x4x8xf32> to vector<4x8xf32>
    %c0_85 = arith.constant 0 : index
    %c1_86 = arith.constant 1 : index
    %c0_87 = arith.constant 0 : index
    %c48_88 = arith.constant 48 : index
    %72 = vector.load %arg3[%c0_85, %c1_86, %c0_87, %c48_88] : memref<1x4x4x64xf32, #tpu.memory_space<vmem>>, vector<1x1x4x8xf32>
    %73 = vector.shape_cast %72 : vector<1x1x4x8xf32> to vector<4x8xf32>
    %74 = vector.shape_cast %71 : vector<4x8xf32> to vector<1x1x4x8xf32>
    tpu.vector_store %arg3[%c0_85, %c1_86, %c0_87, %c48_88], %74 {strides = array<i32>} : memref<1x4x4x64xf32, #tpu.memory_space<vmem>>, vector<1x1x4x8xf32>,
    %c0_89 = arith.constant 0 : index
    %c0_90 = arith.constant 0 : index
    %c120 = arith.constant 120 : index
    %75 = vector.load %arg2[%c0_89, %c0_90, %c120] : memref<1x4x256xf32, #tpu.memory_space<vmem>>, vector<1x4x8xf32>
    %76 = vector.shape_cast %75 : vector<1x4x8xf32> to vector<4x8xf32>
    %c0_91 = arith.constant 0 : index
    %c1_92 = arith.constant 1 : index
    %c0_93 = arith.constant 0 : index
    %c56_94 = arith.constant 56 : index
    %77 = vector.load %arg3[%c0_91, %c1_92, %c0_93, %c56_94] : memref<1x4x4x64xf32, #tpu.memory_space<vmem>>, vector<1x1x4x8xf32>
    %78 = vector.shape_cast %77 : vector<1x1x4x8xf32> to vector<4x8xf32>
    %79 = vector.shape_cast %76 : vector<4x8xf32> to vector<1x1x4x8xf32>
    tpu.vector_store %arg3[%c0_91, %c1_92, %c0_93, %c56_94], %79 {strides = array<i32>} : memref<1x4x4x64xf32, #tpu.memory_space<vmem>>, vector<1x1x4x8xf32>,
    %c0_95 = arith.constant 0 : index
    %c0_96 = arith.constant 0 : index
    %c128 = arith.constant 128 : index
    %80 = vector.load %arg2[%c0_95, %c0_96, %c128] : memref<1x4x256xf32, #tpu.memory_space<vmem>>, vector<1x4x8xf32>
    %81 = vector.shape_cast %80 : vector<1x4x8xf32> to vector<4x8xf32>
    %c0_97 = arith.constant 0 : index
    %c2 = arith.constant 2 : index
    %c0_98 = arith.constant 0 : index
    %c0_99 = arith.constant 0 : index
    %82 = vector.load %arg3[%c0_97, %c2, %c0_98, %c0_99] : memref<1x4x4x64xf32, #tpu.memory_space<vmem>>, vector<1x1x4x8xf32>
    %83 = vector.shape_cast %82 : vector<1x1x4x8xf32> to vector<4x8xf32>
    %84 = vector.shape_cast %81 : vector<4x8xf32> to vector<1x1x4x8xf32>
    tpu.vector_store %arg3[%c0_97, %c2, %c0_98, %c0_99], %84 {strides = array<i32>} : memref<1x4x4x64xf32, #tpu.memory_space<vmem>>, vector<1x1x4x8xf32>,
    %c0_100 = arith.constant 0 : index
    %c0_101 = arith.constant 0 : index
    %c144 = arith.constant 144 : index
    %85 = vector.load %arg2[%c0_100, %c0_101, %c144] : memref<1x4x256xf32, #tpu.memory_space<vmem>>, vector<1x4x8xf32>
    %86 = vector.shape_cast %85 : vector<1x4x8xf32> to vector<4x8xf32>
    %c0_102 = arith.constant 0 : index
    %c2_103 = arith.constant 2 : index
    %c0_104 = arith.constant 0 : index
    %c8_105 = arith.constant 8 : index
    %87 = vector.load %arg3[%c0_102, %c2_103, %c0_104, %c8_105] : memref<1x4x4x64xf32, #tpu.memory_space<vmem>>, vector<1x1x4x8xf32>
    %88 = vector.shape_cast %87 : vector<1x1x4x8xf32> to vector<4x8xf32>
    %89 = vector.shape_cast %86 : vector<4x8xf32> to vector<1x1x4x8xf32>
    tpu.vector_store %arg3[%c0_102, %c2_103, %c0_104, %c8_105], %89 {strides = array<i32>} : memref<1x4x4x64xf32, #tpu.memory_space<vmem>>, vector<1x1x4x8xf32>,
    %c0_106 = arith.constant 0 : index
    %c0_107 = arith.constant 0 : index
    %c160 = arith.constant 160 : index
    %90 = vector.load %arg2[%c0_106, %c0_107, %c160] : memref<1x4x256xf32, #tpu.memory_space<vmem>>, vector<1x4x8xf32>
    %91 = vector.shape_cast %90 : vector<1x4x8xf32> to vector<4x8xf32>
    %c0_108 = arith.constant 0 : index
    %c2_109 = arith.constant 2 : index
    %c0_110 = arith.constant 0 : index
    %c16_111 = arith.constant 16 : index
    %92 = vector.load %arg3[%c0_108, %c2_109, %c0_110, %c16_111] : memref<1x4x4x64xf32, #tpu.memory_space<vmem>>, vector<1x1x4x8xf32>
    %93 = vector.shape_cast %92 : vector<1x1x4x8xf32> to vector<4x8xf32>
    %94 = vector.shape_cast %91 : vector<4x8xf32> to vector<1x1x4x8xf32>
    tpu.vector_store %arg3[%c0_108, %c2_109, %c0_110, %c16_111], %94 {strides = array<i32>} : memref<1x4x4x64xf32, #tpu.memory_space<vmem>>, vector<1x1x4x8xf32>,
    %c0_112 = arith.constant 0 : index
    %c0_113 = arith.constant 0 : index
    %c176 = arith.constant 176 : index
    %95 = vector.load %arg2[%c0_112, %c0_113, %c176] : memref<1x4x256xf32, #tpu.memory_space<vmem>>, vector<1x4x8xf32>
    %96 = vector.shape_cast %95 : vector<1x4x8xf32> to vector<4x8xf32>
    %c0_114 = arith.constant 0 : index
    %c2_115 = arith.constant 2 : index
    %c0_116 = arith.constant 0 : index
    %c24_117 = arith.constant 24 : index
    %97 = vector.load %arg3[%c0_114, %c2_115, %c0_116, %c24_117] : memref<1x4x4x64xf32, #tpu.memory_space<vmem>>, vector<1x1x4x8xf32>
    %98 = vector.shape_cast %97 : vector<1x1x4x8xf32> to vector<4x8xf32>
    %99 = vector.shape_cast %96 : vector<4x8xf32> to vector<1x1x4x8xf32>
    tpu.vector_store %arg3[%c0_114, %c2_115, %c0_116, %c24_117], %99 {strides = array<i32>} : memref<1x4x4x64xf32, #tpu.memory_space<vmem>>, vector<1x1x4x8xf32>,
    %c0_118 = arith.constant 0 : index
    %c0_119 = arith.constant 0 : index
    %c192 = arith.constant 192 : index
    %100 = vector.load %arg2[%c0_118, %c0_119, %c192] : memref<1x4x256xf32, #tpu.memory_space<vmem>>, vector<1x4x8xf32>
    %101 = vector.shape_cast %100 : vector<1x4x8xf32> to vector<4x8xf32>
    %c0_120 = arith.constant 0 : index
    %c2_121 = arith.constant 2 : index
    %c0_122 = arith.constant 0 : index
    %c32_123 = arith.constant 32 : index
    %102 = vector.load %arg3[%c0_120, %c2_121, %c0_122, %c32_123] : memref<1x4x4x64xf32, #tpu.memory_space<vmem>>, vector<1x1x4x8xf32>
    %103 = vector.shape_cast %102 : vector<1x1x4x8xf32> to vector<4x8xf32>
    %104 = vector.shape_cast %101 : vector<4x8xf32> to vector<1x1x4x8xf32>
    tpu.vector_store %arg3[%c0_120, %c2_121, %c0_122, %c32_123], %104 {strides = array<i32>} : memref<1x4x4x64xf32, #tpu.memory_space<vmem>>, vector<1x1x4x8xf32>,
    %c0_124 = arith.constant 0 : index
    %c0_125 = arith.constant 0 : index
    %c208 = arith.constant 208 : index
    %105 = vector.load %arg2[%c0_124, %c0_125, %c208] : memref<1x4x256xf32, #tpu.memory_space<vmem>>, vector<1x4x8xf32>
    %106 = vector.shape_cast %105 : vector<1x4x8xf32> to vector<4x8xf32>
    %c0_126 = arith.constant 0 : index
    %c2_127 = arith.constant 2 : index
    %c0_128 = arith.constant 0 : index
    %c40_129 = arith.constant 40 : index
    %107 = vector.load %arg3[%c0_126, %c2_127, %c0_128, %c40_129] : memref<1x4x4x64xf32, #tpu.memory_space<vmem>>, vector<1x1x4x8xf32>
    %108 = vector.shape_cast %107 : vector<1x1x4x8xf32> to vector<4x8xf32>
    %109 = vector.shape_cast %106 : vector<4x8xf32> to vector<1x1x4x8xf32>
    tpu.vector_store %arg3[%c0_126, %c2_127, %c0_128, %c40_129], %109 {strides = array<i32>} : memref<1x4x4x64xf32, #tpu.memory_space<vmem>>, vector<1x1x4x8xf32>,
    %c0_130 = arith.constant 0 : index
    %c0_131 = arith.constant 0 : index
    %c224 = arith.constant 224 : index
    %110 = vector.load %arg2[%c0_130, %c0_131, %c224] : memref<1x4x256xf32, #tpu.memory_space<vmem>>, vector<1x4x8xf32>
    %111 = vector.shape_cast %110 : vector<1x4x8xf32> to vector<4x8xf32>
    %c0_132 = arith.constant 0 : index
    %c2_133 = arith.constant 2 : index
    %c0_134 = arith.constant 0 : index
    %c48_135 = arith.constant 48 : index
    %112 = vector.load %arg3[%c0_132, %c2_133, %c0_134, %c48_135] : memref<1x4x4x64xf32, #tpu.memory_space<vmem>>, vector<1x1x4x8xf32>
    %113 = vector.shape_cast %112 : vector<1x1x4x8xf32> to vector<4x8xf32>
    %114 = vector.shape_cast %111 : vector<4x8xf32> to vector<1x1x4x8xf32>
    tpu.vector_store %arg3[%c0_132, %c2_133, %c0_134, %c48_135], %114 {strides = array<i32>} : memref<1x4x4x64xf32, #tpu.memory_space<vmem>>, vector<1x1x4x8xf32>,
    %c0_136 = arith.constant 0 : index
    %c0_137 = arith.constant 0 : index
    %c240 = arith.constant 240 : index
    %115 = vector.load %arg2[%c0_136, %c0_137, %c240] : memref<1x4x256xf32, #tpu.memory_space<vmem>>, vector<1x4x8xf32>
    %116 = vector.shape_cast %115 : vector<1x4x8xf32> to vector<4x8xf32>
    %c0_138 = arith.constant 0 : index
    %c2_139 = arith.constant 2 : index
    %c0_140 = arith.constant 0 : index
    %c56_141 = arith.constant 56 : index
    %117 = vector.load %arg3[%c0_138, %c2_139, %c0_140, %c56_141] : memref<1x4x4x64xf32, #tpu.memory_space<vmem>>, vector<1x1x4x8xf32>
    %118 = vector.shape_cast %117 : vector<1x1x4x8xf32> to vector<4x8xf32>
    %119 = vector.shape_cast %116 : vector<4x8xf32> to vector<1x1x4x8xf32>
    tpu.vector_store %arg3[%c0_138, %c2_139, %c0_140, %c56_141], %119 {strides = array<i32>} : memref<1x4x4x64xf32, #tpu.memory_space<vmem>>, vector<1x1x4x8xf32>,
    %c0_142 = arith.constant 0 : index
    %c0_143 = arith.constant 0 : index
    %c136 = arith.constant 136 : index
    %120 = vector.load %arg2[%c0_142, %c0_143, %c136] : memref<1x4x256xf32, #tpu.memory_space<vmem>>, vector<1x4x8xf32>
    %121 = vector.shape_cast %120 : vector<1x4x8xf32> to vector<4x8xf32>
    %c0_144 = arith.constant 0 : index
    %c3 = arith.constant 3 : index
    %c0_145 = arith.constant 0 : index
    %c0_146 = arith.constant 0 : index
    %122 = vector.load %arg3[%c0_144, %c3, %c0_145, %c0_146] : memref<1x4x4x64xf32, #tpu.memory_space<vmem>>, vector<1x1x4x8xf32>
    %123 = vector.shape_cast %122 : vector<1x1x4x8xf32> to vector<4x8xf32>
    %124 = vector.shape_cast %121 : vector<4x8xf32> to vector<1x1x4x8xf32>
    tpu.vector_store %arg3[%c0_144, %c3, %c0_145, %c0_146], %124 {strides = array<i32>} : memref<1x4x4x64xf32, #tpu.memory_space<vmem>>, vector<1x1x4x8xf32>,
    %c0_147 = arith.constant 0 : index
    %c0_148 = arith.constant 0 : index
    %c152 = arith.constant 152 : index
    %125 = vector.load %arg2[%c0_147, %c0_148, %c152] : memref<1x4x256xf32, #tpu.memory_space<vmem>>, vector<1x4x8xf32>
    %126 = vector.shape_cast %125 : vector<1x4x8xf32> to vector<4x8xf32>
    %c0_149 = arith.constant 0 : index
    %c3_150 = arith.constant 3 : index
    %c0_151 = arith.constant 0 : index
    %c8_152 = arith.constant 8 : index
    %127 = vector.load %arg3[%c0_149, %c3_150, %c0_151, %c8_152] : memref<1x4x4x64xf32, #tpu.memory_space<vmem>>, vector<1x1x4x8xf32>
    %128 = vector.shape_cast %127 : vector<1x1x4x8xf32> to vector<4x8xf32>
    %129 = vector.shape_cast %126 : vector<4x8xf32> to vector<1x1x4x8xf32>
    tpu.vector_store %arg3[%c0_149, %c3_150, %c0_151, %c8_152], %129 {strides = array<i32>} : memref<1x4x4x64xf32, #tpu.memory_space<vmem>>, vector<1x1x4x8xf32>,
    %c0_153 = arith.constant 0 : index
    %c0_154 = arith.constant 0 : index
    %c168 = arith.constant 168 : index
    %130 = vector.load %arg2[%c0_153, %c0_154, %c168] : memref<1x4x256xf32, #tpu.memory_space<vmem>>, vector<1x4x8xf32>
    %131 = vector.shape_cast %130 : vector<1x4x8xf32> to vector<4x8xf32>
    %c0_155 = arith.constant 0 : index
    %c3_156 = arith.constant 3 : index
    %c0_157 = arith.constant 0 : index
    %c16_158 = arith.constant 16 : index
    %132 = vector.load %arg3[%c0_155, %c3_156, %c0_157, %c16_158] : memref<1x4x4x64xf32, #tpu.memory_space<vmem>>, vector<1x1x4x8xf32>
    %133 = vector.shape_cast %132 : vector<1x1x4x8xf32> to vector<4x8xf32>
    %134 = vector.shape_cast %131 : vector<4x8xf32> to vector<1x1x4x8xf32>
    tpu.vector_store %arg3[%c0_155, %c3_156, %c0_157, %c16_158], %134 {strides = array<i32>} : memref<1x4x4x64xf32, #tpu.memory_space<vmem>>, vector<1x1x4x8xf32>,
    %c0_159 = arith.constant 0 : index
    %c0_160 = arith.constant 0 : index
    %c184 = arith.constant 184 : index
    %135 = vector.load %arg2[%c0_159, %c0_160, %c184] : memref<1x4x256xf32, #tpu.memory_space<vmem>>, vector<1x4x8xf32>
    %136 = vector.shape_cast %135 : vector<1x4x8xf32> to vector<4x8xf32>
    %c0_161 = arith.constant 0 : index
    %c3_162 = arith.constant 3 : index
    %c0_163 = arith.constant 0 : index
    %c24_164 = arith.constant 24 : index
    %137 = vector.load %arg3[%c0_161, %c3_162, %c0_163, %c24_164] : memref<1x4x4x64xf32, #tpu.memory_space<vmem>>, vector<1x1x4x8xf32>
    %138 = vector.shape_cast %137 : vector<1x1x4x8xf32> to vector<4x8xf32>
    %139 = vector.shape_cast %136 : vector<4x8xf32> to vector<1x1x4x8xf32>
    tpu.vector_store %arg3[%c0_161, %c3_162, %c0_163, %c24_164], %139 {strides = array<i32>} : memref<1x4x4x64xf32, #tpu.memory_space<vmem>>, vector<1x1x4x8xf32>,
    %c0_165 = arith.constant 0 : index
    %c0_166 = arith.constant 0 : index
    %c200 = arith.constant 200 : index
    %140 = vector.load %arg2[%c0_165, %c0_166, %c200] : memref<1x4x256xf32, #tpu.memory_space<vmem>>, vector<1x4x8xf32>
    %141 = vector.shape_cast %140 : vector<1x4x8xf32> to vector<4x8xf32>
    %c0_167 = arith.constant 0 : index
    %c3_168 = arith.constant 3 : index
    %c0_169 = arith.constant 0 : index
    %c32_170 = arith.constant 32 : index
    %142 = vector.load %arg3[%c0_167, %c3_168, %c0_169, %c32_170] : memref<1x4x4x64xf32, #tpu.memory_space<vmem>>, vector<1x1x4x8xf32>
    %143 = vector.shape_cast %142 : vector<1x1x4x8xf32> to vector<4x8xf32>
    %144 = vector.shape_cast %141 : vector<4x8xf32> to vector<1x1x4x8xf32>
    tpu.vector_store %arg3[%c0_167, %c3_168, %c0_169, %c32_170], %144 {strides = array<i32>} : memref<1x4x4x64xf32, #tpu.memory_space<vmem>>, vector<1x1x4x8xf32>,
    %c0_171 = arith.constant 0 : index
    %c0_172 = arith.constant 0 : index
    %c216 = arith.constant 216 : index
    %145 = vector.load %arg2[%c0_171, %c0_172, %c216] : memref<1x4x256xf32, #tpu.memory_space<vmem>>, vector<1x4x8xf32>
    %146 = vector.shape_cast %145 : vector<1x4x8xf32> to vector<4x8xf32>
    %c0_173 = arith.constant 0 : index
    %c3_174 = arith.constant 3 : index
    %c0_175 = arith.constant 0 : index
    %c40_176 = arith.constant 40 : index
    %147 = vector.load %arg3[%c0_173, %c3_174, %c0_175, %c40_176] : memref<1x4x4x64xf32, #tpu.memory_space<vmem>>, vector<1x1x4x8xf32>
    %148 = vector.shape_cast %147 : vector<1x1x4x8xf32> to vector<4x8xf32>
    %149 = vector.shape_cast %146 : vector<4x8xf32> to vector<1x1x4x8xf32>
    tpu.vector_store %arg3[%c0_173, %c3_174, %c0_175, %c40_176], %149 {strides = array<i32>} : memref<1x4x4x64xf32, #tpu.memory_space<vmem>>, vector<1x1x4x8xf32>,
    %c0_177 = arith.constant 0 : index
    %c0_178 = arith.constant 0 : index
    %c232 = arith.constant 232 : index
    %150 = vector.load %arg2[%c0_177, %c0_178, %c232] : memref<1x4x256xf32, #tpu.memory_space<vmem>>, vector<1x4x8xf32>
    %151 = vector.shape_cast %150 : vector<1x4x8xf32> to vector<4x8xf32>
    %c0_179 = arith.constant 0 : index
    %c3_180 = arith.constant 3 : index
    %c0_181 = arith.constant 0 : index
    %c48_182 = arith.constant 48 : index
    %152 = vector.load %arg3[%c0_179, %c3_180, %c0_181, %c48_182] : memref<1x4x4x64xf32, #tpu.memory_space<vmem>>, vector<1x1x4x8xf32>
    %153 = vector.shape_cast %152 : vector<1x1x4x8xf32> to vector<4x8xf32>
    %154 = vector.shape_cast %151 : vector<4x8xf32> to vector<1x1x4x8xf32>
    tpu.vector_store %arg3[%c0_179, %c3_180, %c0_181, %c48_182], %154 {strides = array<i32>} : memref<1x4x4x64xf32, #tpu.memory_space<vmem>>, vector<1x1x4x8xf32>,
    %c0_183 = arith.constant 0 : index
    %c0_184 = arith.constant 0 : index
    %c248 = arith.constant 248 : index
    %155 = vector.load %arg2[%c0_183, %c0_184, %c248] : memref<1x4x256xf32, #tpu.memory_space<vmem>>, vector<1x4x8xf32>
    %156 = vector.shape_cast %155 : vector<1x4x8xf32> to vector<4x8xf32>
    %c0_185 = arith.constant 0 : index
    %c3_186 = arith.constant 3 : index
    %c0_187 = arith.constant 0 : index
    %c56_188 = arith.constant 56 : index
    %157 = vector.load %arg3[%c0_185, %c3_186, %c0_187, %c56_188] : memref<1x4x4x64xf32, #tpu.memory_space<vmem>>, vector<1x1x4x8xf32>
    %158 = vector.shape_cast %157 : vector<1x1x4x8xf32> to vector<4x8xf32>
    %159 = vector.shape_cast %156 : vector<4x8xf32> to vector<1x1x4x8xf32>
    tpu.vector_store %arg3[%c0_185, %c3_186, %c0_187, %c56_188], %159 {strides = array<i32>} : memref<1x4x4x64xf32, #tpu.memory_space<vmem>>, vector<1x1x4x8xf32>,
    return
  }
  func.func @transform_0(%arg0: i32, %arg1: i32) -> (i32, i32, i32) {
    %c0_i32 = arith.constant 0 : i32
    %c0_i32_0 = arith.constant 0 : i32
    return %arg0, %arg1, %c0_i32 : i32, i32, i32
  }
  func.func @transform_1(%arg0: i32, %arg1: i32) -> (i32, i32, i32, i32) {
    %c0_i32 = arith.constant 0 : i32
    %c0_i32_0 = arith.constant 0 : i32
    %c0_i32_1 = arith.constant 0 : i32
    return %arg0, %c0_i32, %arg1, %c0_i32_0 : i32, i32, i32, i32
  }
}

</mosaic_0001>

<bundles_post_ra>
// kernel: tpu_custom_call.1
= control target key start
LH: loop header
LB: loop body
LE: loop exit
PB: predicated region body
PF: predicated region fallthrough
CT: control target
= control target key end

     0   :  { %6 = vsyncpa [#allocation3], 0  ;;  %s1010_s0 = inlined_call_operand.hbm [shape: f32[2,4,256], index: 0, kind: input, shape index: {}]   ;;  %s1011_s1 = inlined_call_operand.hbm [shape: f32[2,4,4,64], index: 1, kind: output, shape index: {}]  }
   0x1   :  { %8 = vsyncpa [#allocation3 + $0x1], 0 }
   0x2   :  { %9 = vsyncpa [#allocation4], 0 }
   0x3   :  { %11 = vsyncpa [#allocation4 + $0x1], 0  ;;  %s756_s6 = smov 0   ;;  %s758_s7 = smov 0  }
   0x4   :  { %s760_s8 = smov 0   ;;  %s762_s9 = smov 0  }
   0x5   :  { %s764_s10 = smov 0   ;;  %s766_s11 = smov 0  }
   0x6 LB: > { %s511_s12 = sadd.s32 4294967295, %s735_s11   ;;  %s512_s13 = sadd.s32 4294967294, %s735_s11   ;;  %s735_s11 = sphi %s766_s11, %s17_s11   ;;  %s731_s10 = sphi %s764_s10, %s1020_s10   ;;  %s727_s9 = sphi %s762_s9, %s1019_s9   ;;  %s723_s8 = sphi %s760_s8, %s1018_s8   ;;  %s719_s7 = sphi %s758_s7, %s1017_s7   ;;  %s715_s6 = sphi %s756_s6, %s1016_s6  }
   0x7   : > { %s29_s14 = sadd.s32 1, %s731_s10  ;;  %s38_s15 = sadd.s32 1, %s723_s8 }
   0x8   : > { %p31_p0 = scmp.ge.s32.totalorder %s29_s14, 2  ;;  %p45_p1 = scmp.ne.s32.totalorder %s723_s8, %s719_s7 }
   0x9   : > { %p46_p2 = scmp.eq.s32.totalorder %s735_s11, 0  ;;  %p51_p3 = scmp.ne.s32.totalorder %s719_s7, %s715_s6 }
   0xa   : > { %s1022_s14 = smov (%p31_p0, %s29_s14), 0  ;;  %p52_p5 = scmp.eq.s32.totalorder %s511_s12, 0 }
   0xb   : > { %p797_p4 = por %p46_p2, %p45_p1  ;;  %s33_s17 = ssub.s32 %s731_s10, %s1022_s14 }
   0xc   : > { %p77_p6 = scmp.eq.s32.totalorder %s511_s12, 1  ;;  %p36_p7 = scmp.eq.s32.totalorder %s33_s17, 0 }
   0xd   : > { %p803_p8 = por %p52_p5, %p51_p3  ;;  %p83_p10 = scmp.eq.s32.totalorder %s512_s13, 1 }
   0xe   : > { %p807_p9 = por %p77_p6, %p45_p1  ;;  %p514_p12 = scmp.ge.s32.totalorder %s735_s11, 2 }
   0xf   : > { %s812_s20 = scalar_select %p36_p7, %s723_s8, %s38_s15  }
  0x10   : > { %p814_p11 = por %p83_p10, %p51_p3  ;;  %p564_p13 = scmp.lt.s32.totalorder %s735_s11, 2 }
  0x11   : > { %s103_s22 = sand.u32 1, %s723_s8   ;;  %s550_s24 = sshll.u32 %s731_s10, 3 }
  0x12   : > { %s515_s23 = sshll.u32 %s103_s22, 3  ;;  %s114_s27 = scalar_lea.hbm %s1010_s0, %s550_s24 }
  0x13   : > { %s107_s28 = scalar_lea.vmem [#allocation2], %s515_s23  ;;  %s116_s30 = sshll.u32 %s114_s27, 4  ;;  %s117_s30 = int_to_ptr.hbm [resolvable:$true] %s116_s30 }
  0x14   : > { %s118_s29 = sshll.u32 %s107_s28, 4  ;;  %p557_p0 = pnand %p564_p13, %p797_p4  ;;  %s119_s29 = int_to_ptr.vmem [resolvable:$true] %s118_s29 }
  0x15   : > { %p518_p1 = scmp.ge.s32.totalorder %s735_s11, 1  ;;  %p123_p2 = scmp.lt.s32.totalorder %s735_s11, 3 }
  0x16   : > { %s104_s2 = scalar_lea.sflag [#allocation3], %s103_s22 }
  0x17   : > { %559 = dma.hbm_to_vmem [thread:$0]  (!%p557_p0), %s117_s30, 128, %s119_s29, %s104_s2  }
  0x18   : > { %p124_p3 = pnand %p518_p1, %p123_p2 }
  0x19   : > { %s830_s3 = sand.u32 (!%p124_p3), 1, %s719_s7  }
  0x1a   : > { %127 = sbr.rel (%p124_p3) target bundleno = 386 (0x182), region = 24  ;;  %s519_s4 = sshll.u32 (!%p124_p3), %s830_s3, 3 }
  0x1b   : > { %s130_s5 = scalar_lea.sflag (!%p124_p3), [#allocation3], %s830_s3  ;;  %s834_s12 = scalar_lea.vmem (!%p124_p3), [#allocation2], %s519_s4 }
  0x1f   : > { %706 = dma.done.wait (%p803_p8), %s130_s5, 128  }
  0x20   : > { %708 = vsyncadd (%p803_p8), %s130_s5, 4294967168  ;;  %v156_v0 = vld [vmem:[%s834_s12] sm:$0xf]  ;;  %s737_s13 = smov 120   ;;  %s738_s15 = smov 112   ;;  %vm154_vm0 = vcmask 60416  }
  0x21   : > { %158 = vst [vmem:[#allocation1] ss:$2 sm:$0xff] %v156_v0  ;;  %v165_v1 = vld [vmem:[%s834_s12] sm:$0xf]  ;;  %s739_s16 = smov 104   ;;  %s740_s17 = smov 96  }
  0x22   : > { %v174_v3 = vld [vmem:[%s834_s12] sm:$0xf]  ;;  %s741_s18 = smov 88   ;;  %s742_s22 = smov 80   ;;  %v287_v29 = vld [vmem:[%s834_s12 + $0x4] sm:$0xf] }
  0x23   : > { %v183_v5 = vld [vmem:[%s834_s12] sm:$0xf]  ;;  %s743_s23 = smov 72   ;;  %s744_s24 = smov 64   ;;  %v295_v31 = vld [vmem:[%s834_s12 + $0x4] sm:$0xf] }
  0x24   : > { %v192_v7 = vld [vmem:[%s834_s12] sm:$0xf]  ;;  %v303_v33 = vld [vmem:[%s834_s12 + $0x4] sm:$0xf]  ;;  %s520_s25 = sshll.u32 %s830_s3, 4  ;;  %vm163_vm1 = vcmask 126016  }
  0x25   : > { %v201_v9 = vld [vmem:[%s834_s12] sm:$0xf]  ;;  %v311_v35 = vld [vmem:[%s834_s12 + $0x4] sm:$0xf]  ;;  %s894_s26 = scalar_lea.vmem [#allocation5], %s520_s25  ;;  %vm172_vm2 = vcmask 191616  }
  0x26   : > { %v210_v11 = vld [vmem:[%s834_s12] sm:$0xf]  ;;  %v319_v37 = vld [vmem:[%s834_s12 + $0x4] sm:$0xf]  ;;  %vm181_vm3 = vcmask 257216   ;;  %vm190_vm4 = vcmask 322816  }
  0x27   : > { %v219_v13 = vld [vmem:[%s834_s12] sm:$0xf]  ;;  %v327_v39 = vld [vmem:[%s834_s12 + $0x4] sm:$0xf]  ;;  %vm199_vm5 = vcmask 388416   ;;  %vm208_vm6 = vcmask 454016  }
  0x28   : > { %v159_v2 = vld.sshfl [vmem:[#allocation1] sm:$0xff pattern:$0x75316420]  ;;  %v228_v15 = vld [vmem:[%s834_s12] sm:$0xf]  ;;  %vm217_vm7 = vcmask 519616  }
  0x29   : > { %160 = vrot.lane.b32.xlu0 %v159_v2, %s737_s13  ;;  %167 = vst [vmem:[#allocation1] ss:$2 sm:$0xff] %v165_v1  ;;  %v236_v17 = vld [vmem:[%s834_s12] sm:$0xf]  ;;  %v335_v41 = vld [vmem:[%s834_s12 + $0x4] sm:$0xf] }
  0x2a   : > { %v244_v19 = vld [vmem:[%s834_s12] sm:$0xf]  ;;  %v343_v43 = vld [vmem:[%s834_s12 + $0x4] sm:$0xf]  ;;  %s551_s27 = sshll.u32 %s727_s9, 4  ;;  %s422_s2 = sshll.u32 %s894_s26, 4  ;;  %s423_s2 = int_to_ptr.vmem [resolvable:$true] %s422_s2 }
  0x2b   : > { %v252_v21 = vld [vmem:[%s834_s12] sm:$0xf]  ;;  %v352_v45 = vld [vmem:[%s834_s12 + $0x4] sm:$0xf]  ;;  %s421_s30 = scalar_lea.hbm %s1011_s1, %s551_s27  ;;  %s409_s9 = scalar_lea.sflag [#allocation4], %s830_s3 }
  0x2c   : > { %v260_v23 = vld [vmem:[%s834_s12] sm:$0xf]  ;;  %v360_v47 = vld [vmem:[%s834_s12 + $0x4] sm:$0xf]  ;;  %s424_s4 = sshll.u32 %s421_s30, 4  ;;  %s425_s4 = int_to_ptr.hbm [resolvable:$true] %s424_s4 }
  0x2d   : > { %v268_v25 = vld [vmem:[%s834_s12] sm:$0xf]  ;;  %v368_v49 = vld [vmem:[%s834_s12 + $0x4] sm:$0xf]  ;;  %s667_s5 = sshra.s32 %s425_s4, 4  ;;  %s668_s5 = int_to_ptr.hbm [resolvable:$true] %s667_s5 }
  0x2e   : > { %v276_v27 = vld [vmem:[%s834_s12] sm:$0xf]  ;;  %v376_v51 = vld [vmem:[%s834_s12 + $0x4] sm:$0xf]  ;;  %p674_p7 = scmp.lt.s32.totalorder %s668_s5, %s1011_s1 }
  0x2f   : > { %v153_v54 = vld [vmem:[%s834_s12] sm:$0xf]  ;;  %v284_v57 = vld [vmem:[%s834_s12 + $0x4] sm:$0xf] }
  0x30   : > { %v168_v4 = vld.sshfl [vmem:[#allocation1] sm:$0xff pattern:$0x75316420]  ;;  %155 = vst.msk [vmem:[%s894_s26] sm:$0xf] %vm154_vm0, %v153_v54 }
  0x31   : > { %176 = vst [vmem:[#allocation1] ss:$2 sm:$0xff] %v174_v3  ;;  %169 = vrot.lane.b32.xlu0 %v168_v4, %s738_s15  ;;  %v384_v58 = vld [vmem:[%s834_s12 + $0x4] sm:$0xf] }
  0x32   : > { %529 = vst.msk [vmem:[%s894_s26 + $0x8] sm:$0xf] %vm154_vm0, %v284_v57  ;;  %v392_v63 = vld [vmem:[%s834_s12 + $0x4] sm:$0xf] }
  0x33   : > { %v400_v4 = vld [vmem:[%s834_s12 + $0x4] sm:$0xf]  ;;  %s669_s12 = scalar_lea.hbm %s668_s5, 16 }
  0x34   : > { %p670_p4 = scmp.ne.s32.totalorder %s668_s5, %s669_s12 }
  0x36   : > { %p671_p5 = pnand %p670_p4, %p807_p9 }
  0x38   : > { %v177_v6 = vld.sshfl [vmem:[#allocation1] sm:$0xff pattern:$0x75316420]  ;;  %p672_p6 = pneg %p671_p5 }
  0x39   : > { %178 = vrot.lane.b32.xlu1 %v177_v6, %s739_s16  ;;  %185 = vst [vmem:[#allocation1] ss:$2 sm:$0xff] %v183_v5 }
  0x40   : > { %v186_v8 = vld.sshfl [vmem:[#allocation1] sm:$0xff pattern:$0x75316420] }
  0x41   : > { %187 = vrot.lane.b32.xlu1 %v186_v8, %s740_s17  ;;  %194 = vst [vmem:[#allocation1] ss:$2 sm:$0xff] %v192_v7 }
  0x48   : > { %v195_v10 = vld.sshfl [vmem:[#allocation1] sm:$0xff pattern:$0x75316420] }
  0x49   : > { %203 = vst [vmem:[#allocation1] ss:$2 sm:$0xff] %v201_v9  ;;  %196 = vrot.lane.b32.xlu2 %v195_v10, %s741_s18 }
  0x50   : > { %v204_v12 = vld.sshfl [vmem:[#allocation1] sm:$0xff pattern:$0x75316420] }
  0x51   : > { %212 = vst [vmem:[#allocation1] ss:$2 sm:$0xff] %v210_v11  ;;  %205 = vrot.lane.b32.xlu2 %v204_v12, %s742_s22 }
  0x58   : > { %v213_v14 = vld.sshfl [vmem:[#allocation1] sm:$0xff pattern:$0x75316420] }
  0x59   : > { %214 = vrot.lane.b32.xlu0 %v213_v14, %s743_s23  ;;  %221 = vst [vmem:[#allocation1] ss:$2 sm:$0xff] %v219_v13 }
  0x60   : > { %v222_v16 = vld.sshfl [vmem:[#allocation1] sm:$0xff pattern:$0x75316420] }
  0x61   : > { %223 = vrot.lane.b32.xlu1 %v222_v16, %s737_s13  ;;  %230 = vst [vmem:[#allocation1] ss:$2 sm:$0xff] %v228_v15 }
  0x68   : > { %v231_v18 = vld.sshfl [vmem:[#allocation1] sm:$0xff pattern:$0x75316420] }
  0x69   : > { %238 = vst [vmem:[#allocation1] ss:$2 sm:$0xff] %v236_v17  ;;  %232 = vrot.lane.b32.xlu2 %v231_v18, %s738_s15 }
  0x70   : > { %v239_v20 = vld.sshfl [vmem:[#allocation1] sm:$0xff pattern:$0x75316420] }
  0x71   : > { %240 = vrot.lane.b32.xlu0 %v239_v20, %s739_s16  ;;  %246 = vst [vmem:[#allocation1] ss:$2 sm:$0xff] %v244_v19 }
  0x78   : > { %v247_v22 = vld.sshfl [vmem:[#allocation1] sm:$0xff pattern:$0x75316420] }
  0x79   : > { %248 = vrot.lane.b32.xlu1 %v247_v22, %s740_s17  ;;  %254 = vst [vmem:[#allocation1] ss:$2 sm:$0xff] %v252_v21 }
  0x80   : > { %v255_v24 = vld.sshfl [vmem:[#allocation1] sm:$0xff pattern:$0x75316420] }
  0x81   : > { %262 = vst [vmem:[#allocation1] ss:$2 sm:$0xff] %v260_v23  ;;  %256 = vrot.lane.b32.xlu2 %v255_v24, %s741_s18 }
  0x88   : > { %v263_v26 = vld.sshfl [vmem:[#allocation1] sm:$0xff pattern:$0x75316420] }
  0x89   : > { %264 = vrot.lane.b32.xlu0 %v263_v26, %s742_s22  ;;  %270 = vst [vmem:[#allocation1] ss:$2 sm:$0xff] %v268_v25 }
  0x90   : > { %v271_v28 = vld.sshfl [vmem:[#allocation1] sm:$0xff pattern:$0x75316420] }
  0x91   : > { %272 = vrot.lane.b32.xlu1 %v271_v28, %s743_s23  ;;  %278 = vst [vmem:[#allocation1] ss:$2 sm:$0xff] %v276_v27 }
  0x98   : > { %v279_v30 = vld.sshfl [vmem:[#allocation1] sm:$0xff pattern:$0x75316420] }
  0x99   : > { %289 = vst [vmem:[#allocation1] ss:$2 sm:$0xff] %v287_v29  ;;  %280 = vrot.lane.b32.xlu2 %v279_v30, %s744_s24 }
  0x9b   : > { %v161_v53 = vpop.permute.xlu0 %160 }
  0x9c   : > { %164 = vst.msk [vmem:[%s894_s26] sm:$0xf] %vm163_vm1, %v161_v53 }
  0xa0   : > { %v290_v32 = vld.sshfl [vmem:[#allocation1] sm:$0xff pattern:$0x75316420] }
  0xa1   : > { %291 = vrot.lane.b32.xlu1 %v290_v32, %s737_s13  ;;  %297 = vst [vmem:[#allocation1] ss:$2 sm:$0xff] %v295_v31 }
  0xa3   : > { %v197_v56 = vpop.permute.xlu2 %196  ;;  %v170_v60 = vpop.permute.xlu0 %169 }
  0xa4   : > { %173 = vst.msk [vmem:[%s894_s26] sm:$0xf] %vm172_vm2, %v170_v60 }
  0xa8   : > { %v298_v34 = vld.sshfl [vmem:[#allocation1] sm:$0xff pattern:$0x75316420] }
  0xa9   : > { %299 = vrot.lane.b32.xlu0 %v298_v34, %s738_s15  ;;  %305 = vst [vmem:[#allocation1] ss:$2 sm:$0xff] %v303_v33 }
  0xab   : > { %v179_v55 = vpop.permute.xlu1 %178  ;;  %v206_v62 = vpop.permute.xlu2 %205 }
  0xac   : > { %182 = vst.msk [vmem:[%s894_s26] sm:$0xf] %vm181_vm3, %v179_v55 }
  0xb0   : > { %v306_v36 = vld.sshfl [vmem:[#allocation1] sm:$0xff pattern:$0x75316420] }
  0xb1   : > { %313 = vst [vmem:[#allocation1] ss:$2 sm:$0xff] %v311_v35  ;;  %307 = vrot.lane.b32.xlu2 %v306_v36, %s739_s16 }
  0xb3   : > { %v188_v61 = vpop.permute.xlu1 %187 }
  0xb4   : > { %191 = vst.msk [vmem:[%s894_s26] sm:$0xf] %vm190_vm4, %v188_v61 }
  0xb5   : > { %200 = vst.msk [vmem:[%s894_s26] sm:$0xf] %vm199_vm5, %v197_v56 }
  0xb6   : > { %209 = vst.msk [vmem:[%s894_s26] sm:$0xf] %vm208_vm6, %v206_v62 }
  0xb8   : > { %v314_v38 = vld.sshfl [vmem:[#allocation1] sm:$0xff pattern:$0x75316420] }
  0xb9   : > { %315 = vrot.lane.b32.xlu1 %v314_v38, %s740_s17  ;;  %321 = vst [vmem:[#allocation1] ss:$2 sm:$0xff] %v319_v37 }
  0xc0   : > { %v322_v40 = vld.sshfl [vmem:[#allocation1] sm:$0xff pattern:$0x75316420] }
  0xc1   : > { %323 = vrot.lane.b32.xlu0 %v322_v40, %s741_s18  ;;  %329 = vst [vmem:[#allocation1] ss:$2 sm:$0xff] %v327_v39 }
  0xc3   : > { %v233_v3 = vpop.permute.xlu2 %232 }
  0xc8   : > { %v330_v42 = vld.sshfl [vmem:[#allocation1] sm:$0xff pattern:$0x75316420] }
  0xc9   : > { %337 = vst [vmem:[#allocation1] ss:$2 sm:$0xff] %v335_v41  ;;  %331 = vrot.lane.b32.xlu2 %v330_v42, %s742_s22 }
  0xcb   : > { %v215_v1 = vpop.permute.xlu0 %214 }
  0xcc   : > { %218 = vst.msk [vmem:[%s894_s26] sm:$0xf] %vm217_vm7, %v215_v1 }
  0xd0   : > { %v338_v44 = vld.sshfl [vmem:[#allocation1] sm:$0xff pattern:$0x75316420] }
  0xd1   : > { %345 = vst [vmem:[#allocation1] ss:$2 sm:$0xff] %v343_v43 }
  0xd3   : > { %v224_v2 = vpop.permute.xlu1 %223 }
  0xd4   : > { %521 = vst.msk [vmem:[%s894_s26 + $0x4] sm:$0xf] %vm154_vm0, %v224_v2 }
  0xd5   : > { %522 = vst.msk [vmem:[%s894_s26 + $0x4] sm:$0xf] %vm163_vm1, %v233_v3 }
  0xd8   : > { %v346_v46 = vld.sshfl [vmem:[#allocation1] sm:$0xff pattern:$0x75316420] }
  0xd9   : > { %347 = vrot.lane.b32.xlu0 %v346_v46, %s737_s13  ;;  %354 = vst [vmem:[#allocation1] ss:$2 sm:$0xff] %v352_v45 }
  0xdb   : > { %v257_v8 = vpop.permute.xlu2 %256 }
  0xe0   : > { %v355_v48 = vld.sshfl [vmem:[#allocation1] sm:$0xff pattern:$0x75316420] }
  0xe1   : > { %362 = vst [vmem:[#allocation1] ss:$2 sm:$0xff] %v360_v47  ;;  %356 = vrot.lane.b32.xlu2 %v355_v48, %s738_s15 }
  0xe3   : > { %v241_v6 = vpop.permute.xlu0 %240 }
  0xe4   : > { %523 = vst.msk [vmem:[%s894_s26 + $0x4] sm:$0xf] %vm172_vm2, %v241_v6 }
  0xe8   : > { %v363_v50 = vld.sshfl [vmem:[#allocation1] sm:$0xff pattern:$0x75316420] }
  0xe9   : > { %364 = vrot.lane.b32.xlu1 %v363_v50, %s739_s16  ;;  %370 = vst [vmem:[#allocation1] ss:$2 sm:$0xff] %v368_v49  ;;  %s673_s16 = scalar_lea.hbm %s1011_s1, 32 }
  0xea   : > { %p675_p8 = scmp.lt.s32.totalorder %s673_s16, %s669_s12 }
  0xeb   : > { %v249_v7 = vpop.permute.xlu1 %248 }
  0xec   : > { %524 = vst.msk [vmem:[%s894_s26 + $0x4] sm:$0xf] %vm181_vm3, %v249_v7  ;;  %p676_p10 = por %p675_p8, %p674_p7 }
  0xed   : > { %525 = vst.msk [vmem:[%s894_s26 + $0x4] sm:$0xf] %vm190_vm4, %v257_v8 }
  0xee   : > { %p677_p13 = pnand %p676_p10, %p672_p6 }
  0xf0   : > { %v371_v52 = vld.sshfl [vmem:[#allocation1] sm:$0xff pattern:$0x75316420] }
  0xf1   : > { %372 = vrot.lane.b32.xlu0 %v371_v52, %s740_s17  ;;  %378 = vst [vmem:[#allocation1] ss:$2 sm:$0xff] %v376_v51 }
  0xf3   : > { %v281_v12 = vpop.permute.xlu2 %280 }
  0xf8   : > { %v379_v59 = vld.sshfl [vmem:[#allocation1] sm:$0xff pattern:$0x75316420] }
  0xf9   : > { %386 = vst [vmem:[#allocation1] ss:$2 sm:$0xff] %v384_v58  ;;  %380 = vrot.lane.b32.xlu2 %v379_v59, %s741_s18 }
  0xfb   : > { %v265_v10 = vpop.permute.xlu0 %264 }
  0xfc   : > { %526 = vst.msk [vmem:[%s894_s26 + $0x4] sm:$0xf] %vm199_vm5, %v265_v10 }
 0x100   : > { %v387_v0 = vld.sshfl [vmem:[#allocation1] sm:$0xff pattern:$0x75316420] }
 0x101   : > { %388 = vrot.lane.b32.xlu1 %v387_v0, %s742_s22  ;;  %394 = vst [vmem:[#allocation1] ss:$2 sm:$0xff] %v392_v63 }
 0x103   : > { %v273_v11 = vpop.permute.xlu1 %272 }
 0x104   : > { %527 = vst.msk [vmem:[%s894_s26 + $0x4] sm:$0xf] %vm208_vm6, %v273_v11 }
 0x105   : > { %528 = vst.msk [vmem:[%s894_s26 + $0x4] sm:$0xf] %vm217_vm7, %v281_v12 }
 0x108   : > { %v395_v5 = vld.sshfl [vmem:[#allocation1] sm:$0xff pattern:$0x75316420] }
 0x109   : > { %396 = vrot.lane.b32.xlu0 %v395_v5, %s743_s23  ;;  %339 = vrot.lane.b32.xlu1 %v338_v44, %s743_s23  ;;  %402 = vst [vmem:[#allocation1] ss:$2 sm:$0xff] %v400_v4 }
 0x10b   : > { %v308_v14 = vpop.permute.xlu2 %307 }
 0x110   : > { %v403_v9 = vld.sshfl [vmem:[#allocation1] sm:$0xff pattern:$0x75316420] }
 0x111   : > { %404 = vrot.lane.b32.xlu2 %v403_v9, %s744_s24 }
 0x113   : > { %v292_v13 = vpop.permute.xlu1 %291 }
 0x114   : > { %530 = vst.msk [vmem:[%s894_s26 + $0x8] sm:$0xf] %vm163_vm1, %v292_v13 }
 0x11b   : > { %v300_v15 = vpop.permute.xlu0 %299 }
 0x11c   : > { %531 = vst.msk [vmem:[%s894_s26 + $0x8] sm:$0xf] %vm172_vm2, %v300_v15 }
 0x11d   : > { %532 = vst.msk [vmem:[%s894_s26 + $0x8] sm:$0xf] %vm181_vm3, %v308_v14 }
 0x123   : > { %v332_v17 = vpop.permute.xlu2 %331 }
 0x12b   : > { %v316_v16 = vpop.permute.xlu1 %315 }
 0x12c   : > { %533 = vst.msk [vmem:[%s894_s26 + $0x8] sm:$0xf] %vm190_vm4, %v316_v16 }
 0x133   : > { %v324_v18 = vpop.permute.xlu0 %323 }
 0x134   : > { %534 = vst.msk [vmem:[%s894_s26 + $0x8] sm:$0xf] %vm199_vm5, %v324_v18 }
 0x135   : > { %535 = vst.msk [vmem:[%s894_s26 + $0x8] sm:$0xf] %vm208_vm6, %v332_v17 }
 0x13b   : > { %v357_v19 = vpop.permute.xlu2 %356 }
 0x14b   : > { %v348_v20 = vpop.permute.xlu0 %347 }
 0x14c   : > { %537 = vst.msk [vmem:[%s894_s26 + $0xc] sm:$0xf] %vm154_vm0, %v348_v20 }
 0x14d   : > { %538 = vst.msk [vmem:[%s894_s26 + $0xc] sm:$0xf] %vm163_vm1, %v357_v19 }
 0x153   : > { %v381_v22 = vpop.permute.xlu2 %380 }
 0x15b   : > { %v365_v21 = vpop.permute.xlu1 %364 }
 0x15c   : > { %539 = vst.msk [vmem:[%s894_s26 + $0xc] sm:$0xf] %vm172_vm2, %v365_v21 }
 0x163   : > { %v373_v23 = vpop.permute.xlu0 %372 }
 0x164   : > { %540 = vst.msk [vmem:[%s894_s26 + $0xc] sm:$0xf] %vm181_vm3, %v373_v23 }
 0x165   : > { %541 = vst.msk [vmem:[%s894_s26 + $0xc] sm:$0xf] %vm190_vm4, %v381_v22 }
 0x16b   : > { %v405_v25 = vpop.permute.xlu2 %404 }
 0x173   : > { %v389_v24 = vpop.permute.xlu1 %388 }
 0x174   : > { %542 = vst.msk [vmem:[%s894_s26 + $0xc] sm:$0xf] %vm199_vm5, %v389_v24 }
 0x17b   : > { %v397_v26 = vpop.permute.xlu0 %396  ;;  %v340_v27 = vpop.permute.xlu1 %339 }
 0x17c   : > { %543 = vst.msk [vmem:[%s894_s26 + $0xc] sm:$0xf] %vm208_vm6, %v397_v26 }
 0x17d   : > { %536 = vst.msk [vmem:[%s894_s26 + $0x8] sm:$0xf] %vm217_vm7, %v340_v27 }
 0x17e   : > { %544 = vst.msk [vmem:[%s894_s26 + $0xc] sm:$0xf] %vm217_vm7, %v405_v25 }
 0x17f   : > { %680 = shalt.err (!%p677_p13)
}
 0x180   : > { %s745_s3 = smov 4  }
 0x181   : > { %554 = dma.vmem_to_hbm [thread:$0]  (%p807_p9), %s423_s2, 256, %s425_s4, %s409_s9, %s744_s24, %s744_s24, %s745_s3  }
 0x182 PF: > { %s439_s22 = sand.u32 1, %s715_s6   ;;  %p561_p0 = pnand %p514_p12, %p814_p11 }
 0x183   : > { %s440_s23 = scalar_lea.sflag [#allocation4], %s439_s22 }
 0x184   : > { %p562_p1 = pneg %p561_p0 }
 0x186   : > { %710 = dma.done.wait (%p562_p1), %s440_s23, 256  }
 0x187   : > { %712 = vsyncadd (%p562_p1), %s440_s23, 4294967040  ;;  %s17_s11 = sadd.s32 1, %s735_s11   ;;  %s1016_s6 = smov %s719_s7 }
 0x188   : > { %p14_p2 = scmp.ge.s32.totalorder %s17_s11, 4   ;;  %s1017_s7 = smov %s723_s8 }
 0x189   : > { %s1018_s8 = smov %s812_s20  ;;  %s1019_s9 = smov %s731_s10 }
 0x18a   : > { %s1020_s10 = smov %s1022_s14  ;;  %16 = sbr.rel (!%p14_p2) target bundleno = 6 (0x6), region = 72 }
 0x18f   :  { %446 = vsyncpa [#allocation3], 1 }
 0x190   :  { %448 = vsyncpa [#allocation3 + $0x1], 1 }
 0x191   :  { %449 = vsyncpa [#allocation4], 1 }
 0x192   :  { %451 = vsyncpa [#allocation4 + $0x1], 1 }

</bundles_post_ra>
